<compile_context>
chip_gen: v5e
topology: v5e:2x2
jax: 0.10.0
libtpu: 0.0.40
codegen_flags: <defaults>
</compile_context>

<pallas_src>
import jax
import jax.numpy as jnp
from jax import lax
from jax.experimental import pallas as pl
from jax.experimental.pallas import tpu as pltpu


_EPS = 1e-12  # F.normalize default eps


# --------------------------------------------------------------------------- #
# Fused Pallas kernel
# --------------------------------------------------------------------------- #
def _gem_loss_kernel(x_ref, w_ref, label_ref, o_ref):
    """normalize(x), normalize(W), cosine = xn @ wn.T, log_softmax,
    pick label entry per row, negative batch mean -> (1, 1) output."""
    x = x_ref[...]                       # (B, D) f32
    w = w_ref[...]                       # (C, D) f32 (embedding table)
    lbl = label_ref[...]                 # (B, 1) i32

    # F.normalize(v, p=2, dim=1): v / max(||v||_2, eps)   (row-wise)
    xn = x / jnp.maximum(jnp.sqrt(jnp.sum(x * x, axis=1, keepdims=True)), _EPS)
    wn = w / jnp.maximum(jnp.sqrt(jnp.sum(w * w, axis=1, keepdims=True)), _EPS)

    # cosine = xn @ wn.T  — contract embedding dim on the MXU, f32 accumulate.
    cosine = lax.dot_general(
        xn, wn,
        dimension_numbers=(((1,), (1,)), ((), ())),
        preferred_element_type=jnp.float32)               # (B, C)

    # Numerically stable log-softmax over classes.
    m = jnp.max(cosine, axis=1, keepdims=True)
    z = cosine - m
    lse = jnp.log(jnp.sum(jnp.exp(z), axis=1, keepdims=True))
    log_sm = z - lse                                      # (B, C)

    # one_hot(label) * log_softmax summed over classes == value at label col.
    B, C = log_sm.shape
    col = lax.broadcasted_iota(jnp.int32, (B, C), 1)
    picked = jnp.where(col == lbl, log_sm, 0.0)           # (B, C)
    per_ex = jnp.sum(picked, axis=1, keepdims=True)       # (B, 1)

    # loss = -mean over batch (kept as (1,1) so the store stays a vector store)
    loss = -jnp.sum(per_ex, axis=0, keepdims=True) * (1.0 / B)   # (1, 1)
    o_ref[...] = loss


def global_embedding_generator_loss(x, embedding_weight, label):
    """x: (B, D) f32, embedding_weight: (C, D) f32, label: (B,) int -> scalar loss."""
    B, D = x.shape
    C, D2 = embedding_weight.shape
    assert D == D2
    lbl = label.astype(jnp.int32).reshape(B, 1)

    out = pl.pallas_call(
        _gem_loss_kernel,
        out_shape=jax.ShapeDtypeStruct((1, 1), jnp.float32),
        in_specs=[
            pl.BlockSpec(memory_space=pltpu.MemorySpace.VMEM),  # x
            pl.BlockSpec(memory_space=pltpu.MemorySpace.VMEM),  # embedding table
            pl.BlockSpec(memory_space=pltpu.MemorySpace.VMEM),  # labels
        ],
        out_specs=pl.BlockSpec(memory_space=pltpu.MemorySpace.VMEM),
    )(x, embedding_weight, lbl)
    return out[0, 0]


# --------------------------------------------------------------------------- #
# Pure-JAX reference (mirrors the PyTorch module exactly)
# --------------------------------------------------------------------------- #
def reference_loss(x, embedding_weight, label):
    xn = x / jnp.maximum(
        jnp.sqrt(jnp.sum(x * x, axis=1, keepdims=True)), _EPS)
    wn = embedding_weight / jnp.maximum(
        jnp.sqrt(jnp.sum(embedding_weight * embedding_weight, axis=1,
                         keepdims=True)), _EPS)
    cosine = jnp.matmul(xn, wn.T, precision=lax.Precision.HIGHEST)
    log_sm = jax.nn.log_softmax(cosine, axis=1)
    one_hot = jax.nn.one_hot(label, embedding_weight.shape[0],
                             dtype=cosine.dtype)
    return -jnp.mean(jnp.sum(one_hot * log_sm, axis=1))


# --------------------------------------------------------------------------- #
# Driver
# --------------------------------------------------------------------------- #
if __name__ == "__main__":
    # Small shapes consistent with the module: batch=8, embedding_dim=32,
    # num_classes=10.  x plays the role of the (already embedded) features.
    B, D, C = 8, 32, 10

    key = jax.random.PRNGKey(0)
    kx, kw, kl = jax.random.split(key, 3)
    x = jax.random.normal(kx, (B, D), jnp.float32)
    emb_w = jax.random.normal(kw, (C, D), jnp.float32)   # nn.Embedding weight
    label = jax.random.randint(kl, (B,), 0, C, jnp.int32)

    out = jax.block_until_ready(
        jax.jit(global_embedding_generator_loss)(x, emb_w, label))
    ref = jax.block_until_ready(jax.jit(reference_loss)(x, emb_w, label))

    assert out.shape == (), out.shape
    assert jnp.allclose(out, ref, atol=2e-3, rtol=2e-3), (float(out), float(ref))

    print("KERNEL_OK")
</pallas_src>

<mosaic_0001>
module attributes {stable_mosaic.version = 11 : i64} {
  func.func @_gem_loss_kernel(%arg0: memref<8x32xf32, #tpu.memory_space<vmem>>, %arg1: memref<10x32xf32, #tpu.memory_space<vmem>>, %arg2: memref<8x1xi32, #tpu.memory_space<vmem>>, %arg3: memref<1x1xf32, #tpu.memory_space<vmem>>) attributes {dimension_semantics = [], scalar_prefetch = 0 : i64, scratch_operands = 0 : i64, tpu.core_type = #tpu.core_type<tc>} {
    %c0 = arith.constant 0 : index
    %c0_0 = arith.constant 0 : index
    %0 = vector.load %arg0[%c0, %c0_0] : memref<8x32xf32, #tpu.memory_space<vmem>>, vector<8x32xf32>
    %c0_1 = arith.constant 0 : index
    %c0_2 = arith.constant 0 : index
    %1 = vector.load %arg1[%c0_1, %c0_2] : memref<10x32xf32, #tpu.memory_space<vmem>>, vector<10x32xf32>
    %c0_3 = arith.constant 0 : index
    %c0_4 = arith.constant 0 : index
    %2 = vector.load %arg2[%c0_3, %c0_4] : memref<8x1xi32, #tpu.memory_space<vmem>>, vector<8x1xi32>
    %3 = arith.mulf %0, %0 : vector<8x32xf32>
    %cst = arith.constant dense<0.000000e+00> : vector<8xf32>
    %4 = vector.multi_reduction <add>, %3, %cst [1] : vector<8x32xf32> to vector<8xf32>
    %5 = vector.shape_cast %4 : vector<8xf32> to vector<8x1xf32>
    %6 = math.sqrt %5 : vector<8x1xf32>
    %cst_5 = arith.constant 9.99999996E-13 : f32
    %7 = vector.broadcast %cst_5 : f32 to vector<8x1xf32>
    %8 = arith.maximumf %6, %7 : vector<8x1xf32>
    %9 = vector.broadcast %8 : vector<8x1xf32> to vector<8x32xf32>
    %10 = arith.divf %0, %9 : vector<8x32xf32>
    %11 = arith.mulf %1, %1 : vector<10x32xf32>
    %cst_6 = arith.constant dense<0.000000e+00> : vector<10xf32>
    %12 = vector.multi_reduction <add>, %11, %cst_6 [1] : vector<10x32xf32> to vector<10xf32>
    %13 = vector.shape_cast %12 : vector<10xf32> to vector<10x1xf32>
    %14 = math.sqrt %13 : vector<10x1xf32>
    %cst_7 = arith.constant 9.99999996E-13 : f32
    %15 = vector.broadcast %cst_7 : f32 to vector<10x1xf32>
    %16 = arith.maximumf %14, %15 : vector<10x1xf32>
    %17 = vector.broadcast %16 : vector<10x1xf32> to vector<10x32xf32>
    %18 = arith.divf %1, %17 : vector<10x32xf32>
    %cst_8 = arith.constant dense<0.000000e+00> : vector<8x10xf32>
    %19 = tpu.matmul %10, %18, %cst_8 {dimension_numbers = #tpu.dot_dimension_numbers<[1], [1], [0], [0], [0, 0, 1, 0], [], []>} : vector<8x32xf32>, vector<10x32xf32>, vector<8x10xf32> -> vector<8x10xf32>
    %cst_9 = arith.constant dense<0xFF800000> : vector<8xf32>
    %20 = vector.multi_reduction <maximumf>, %19, %cst_9 [1] : vector<8x10xf32> to vector<8xf32>
    %21 = vector.shape_cast %20 : vector<8xf32> to vector<8x1xf32>
    %22 = vector.broadcast %21 : vector<8x1xf32> to vector<8x10xf32>
    %23 = arith.subf %19, %22 : vector<8x10xf32>
    %24 = math.exp %23 : vector<8x10xf32>
    %cst_10 = arith.constant dense<0.000000e+00> : vector<8xf32>
    %25 = vector.multi_reduction <add>, %24, %cst_10 [1] : vector<8x10xf32> to vector<8xf32>
    %26 = vector.shape_cast %25 : vector<8xf32> to vector<8x1xf32>
    %27 = math.log %26 : vector<8x1xf32>
    %28 = vector.broadcast %27 : vector<8x1xf32> to vector<8x10xf32>
    %29 = arith.subf %23, %28 : vector<8x10xf32>
    %30 = tpu.iota {dimensions = array<i32: 1>} : vector<8x10xi32>
    %31 = vector.broadcast %2 : vector<8x1xi32> to vector<8x10xi32>
    %32 = arith.cmpi eq, %30, %31 : vector<8x10xi32>
    %cst_11 = arith.constant 0.000000e+00 : f32
    %33 = vector.broadcast %cst_11 : f32 to vector<8x10xf32>
    %34 = arith.select %32, %29, %33 : vector<8x10xi1>, vector<8x10xf32>
    %cst_12 = arith.constant dense<0.000000e+00> : vector<8xf32>
    %35 = vector.multi_reduction <add>, %34, %cst_12 [1] : vector<8x10xf32> to vector<8xf32>
    %36 = vector.shape_cast %35 : vector<8xf32> to vector<8x1xf32>
    %cst_13 = arith.constant dense<0.000000e+00> : vector<1xf32>
    %37 = vector.multi_reduction <add>, %36, %cst_13 [0] : vector<8x1xf32> to vector<1xf32>
    %38 = vector.shape_cast %37 : vector<1xf32> to vector<1x1xf32>
    %cst_14 = arith.constant 0.000000e+00 : f32
    %39 = vector.broadcast %cst_14 : f32 to vector<1x1xf32>
    %40 = arith.subf %39, %38 : vector<1x1xf32>
    %cst_15 = arith.constant 1.250000e-01 : f32
    %41 = vector.broadcast %cst_15 : f32 to vector<1x1xf32>
    %42 = arith.mulf %40, %41 : vector<1x1xf32>
    %c0_16 = arith.constant 0 : index
    %c0_17 = arith.constant 0 : index
    %43 = vector.load %arg3[%c0_16, %c0_17] : memref<1x1xf32, #tpu.memory_space<vmem>>, vector<1x1xf32>
    tpu.vector_store %arg3[%c0_16, %c0_17], %42 {strides = array<i32>} : memref<1x1xf32, #tpu.memory_space<vmem>>, vector<1x1xf32>,
    return
  }
}

</mosaic_0001>

<bundles_post_ra>
// kernel: global_embedding_generator_loss.1
= control target key start
LH: loop header
LB: loop body
LE: loop exit
PB: predicated region body
PF: predicated region fallthrough
CT: control target
= control target key end

     0   :  { %8 = vsyncpa [#allocation3], 0  ;;  %s350_s0 = inlined_call_operand.vmem [shape: f32[8,32], index: 0, kind: input, shape index: {}]   ;;  %s351_s1 = inlined_call_operand.hbm [shape: f32[10,32], index: 1, kind: input, shape index: {}]   ;;  %s352_s2 = inlined_call_operand.vmem [shape: s32[8,1], index: 2, kind: input, shape index: {}]   ;;  %s353_s3 = inlined_call_operand.hbm [shape: f32[1,1], index: 3, kind: output, shape index: {}]  }
   0x1   :  { %9 = vsyncpa [#allocation4], 0  ;;  %s16_s14 = sshll.u32 %s351_s1, 4  ;;  %s290_s15 = smov [#allocation2]   ;;  %s17_s14 = int_to_ptr.hbm [resolvable:$true] %s16_s14 }
   0x2   :  { %s18_s16 = sshll.u32 %s290_s15, 4  ;;  %s291_s17 = smov 128   ;;  %s19_s16 = int_to_ptr.vmem [resolvable:$true] %s18_s16 }
   0x3   :  { %s292_s18 = smov 8  }
   0x4   :  { %24 = dma.hbm_to_vmem [thread:$0]  %s17_s14, 256, %s19_s16, [#allocation3], %s291_s17, %s291_s17, %s292_s18  }
   0x5   :  { %286 = dma.done.wait [#allocation3], 256  }
   0x6   :  { %287 = vsyncadd [#allocation3], 4294967040  ;;  %v318_v0 = vld [vmem:[#allocation2 + $0x8] sm:$0x3]  ;;  %vm73_vm0 = vcmask 254976   ;;  %v323_v1 = vld [vmem:[%s350_s0] sm:$0xff] }
   0x7   :  { %vm36_vm1 = vcmask 261120   ;;  %v69_v2 = vmul.f32 %v318_v0, %v318_v0  ;;  %v35_v3 = vmul.f32 %v323_v1, %v323_v1  ;;  %v329_v4 = vld [vmem:[#allocation2] sm:$0xff]  ;;  %s202_s24 = sshll.u32 %s353_s3, 4  ;;  %s203_s24 = int_to_ptr.hbm [resolvable:$true] %s202_s24 }
   0x8   :  { %v68_v7 = vmul.f32 %v329_v4, %v329_v4 }
   0x9   :  { %v74_v5 = vsel %vm73_vm0, %v69_v2, 0.0  ;;  %v37_v6 = vsel %vm36_vm1, %v35_v3, 0.0 }
   0xa   :  { %75 = vadd.xlane.f32.xlu0 %v74_v5  ;;  %38 = vadd.xlane.f32.xlu1 %v37_v6  ;;  %v70_v8 = vsel %vm36_vm1, %v68_v7, 0.0 }
  0x12   :  { %71 = vadd.xlane.f32.xlu0 %v70_v8 }
  0x7d   :  { %v76_v9 = vpop.xlane.xlu0 %75  ;;  %v39_v10 = vpop.xlane.xlu1 %38 }
  0x7e   :  { %222 = vrsqrt.f32 %v76_v9  ;;  %vm96_vm2 = vcmp.eq.f32.partialorder %v76_v9, inf  ;;  %vm98_vm3 = vcmp.eq.f32.partialorder %v76_v9, 0.0  ;;  %v99_v28 = vand.u32 2147483648, %v76_v9 }
  0x7f   :  { %224 = vrsqrt.f32 %v39_v10  ;;  %vm47_vm4 = vcmp.eq.f32.partialorder %v39_v10, inf  ;;  %v50_v31 = vand.u32 2147483648, %v39_v10  ;;  %vm49_vm5 = vcmp.eq.f32.partialorder %v39_v10, 0.0 }
  0x84   :  { %v223_v11 = vpop.eup %222 }
  0x85   :  { %v225_v12 = vpop.eup %224  ;;  %v90_v13 = vmul.f32 %v223_v11, %v76_v9  ;;  %v72_v14 = vpop.xlane.xlu0 %71 }
  0x86   :  { %v41_v15 = vmul.f32 %v225_v12, %v39_v10  ;;  %226 = vrsqrt.f32 %v72_v14  ;;  %vm84_vm6 = vcmp.eq.f32.partialorder %v72_v14, inf  ;;  %v87_v41 = vand.u32 2147483648, %v72_v14 }
  0x87   :  { %v91_v16 = vmul.f32 %v223_v11, %v90_v13  ;;  %vm86_vm7 = vcmp.eq.f32.partialorder %v72_v14, 0.0 }
  0x88   :  { %v42_v17 = vmul.f32 %v225_v12, %v41_v15 }
  0x89   :  { %v92_v18 = vmul.f32 0.5, %v91_v16 }
  0x8a   :  { %v43_v19 = vmul.f32 0.5, %v42_v17 }
  0x8b   :  { %v93_v20 = vsub.f32 1.5, %v92_v18  ;;  %v293_v18 = vmov 0  }
  0x8c   :  { %v227_v21 = vpop.eup %226  ;;  %v44_v22 = vsub.f32 1.5, %v43_v19  ;;  %220 = vset.pattern.permute.xlu2 %v293_v18  ;;  %221 = vset.pattern.permute.xlu0 %v293_v18 }
  0x8d   :  { %v94_v23 = vmul.f32 %v223_v11, %v93_v20  ;;  %v78_v24 = vmul.f32 %v227_v21, %v72_v14 }
  0x8e   :  { %v45_v25 = vmul.f32 %v225_v12, %v44_v22 }
  0x8f   :  { %v95_v26 = vmul.f32 %v94_v23, %v76_v9  ;;  %v79_v27 = vmul.f32 %v227_v21, %v78_v24  ;;  %v175_v24 = vlaneseq }
  0x90   :  { %v46_v29 = vmul.f32 %v45_v25, %v39_v10 }
  0x91   :  { %v97_v30 = vsel %vm96_vm2, %v76_v9, %v95_v26  ;;  %v80_v32 = vmul.f32 0.5, %v79_v27  ;;  %v176_v25 = vand.u32 127, %v175_v24 }
  0x92   :  { %v100_v33 = vsel %vm98_vm3, %v99_v28, %v97_v30  ;;  %v48_v34 = vsel %vm47_vm4, %v39_v10, %v46_v29 }
  0x93   :  { %v51_v35 = vsel %vm49_vm5, %v50_v31, %v48_v34  ;;  %v81_v36 = vsub.f32 1.5, %v80_v32  ;;  %v102_v37 = vmax.f32 %v100_v33, 1e-12  ;;  %vm162_vm5 = vcmask 80896  }
  0x94   :  { %v52_v38 = vmax.f32 %v51_v35, 1e-12 }
  0x95   :  { %v82_v39 = vmul.f32 %v227_v21, %v81_v36  ;;  %228 = vrcp.f32 %v102_v37  ;;  %v129_v50 = vand.u32 2147483648, %v102_v37  ;;  %v127_v52 = vand.u32 2147483647, %v102_v37 }
  0x96   :  { %230 = vrcp.f32 %v52_v38  ;;  %vm123_vm9 = vweird.f32 %v102_v37  ;;  %v64_v6 = vand.u32 2147483648, %v52_v38  ;;  %vm58_vm14 = vweird.f32 %v52_v38 }
  0x97   :  { %v83_v40 = vmul.f32 %v82_v39, %v72_v14  ;;  %v130_v56 = vor.u32 1.1754944e-38, %v129_v50  ;;  %vm128_vm11 = vcmp.eq.f32.partialorder %v127_v52, 8.507059e+37  ;;  %v62_v7 = vand.u32 2147483647, %v52_v38 }
  0x99   :  { %v85_v42 = vsel %vm84_vm6, %v72_v14, %v83_v40  ;;  %vm63_vm4 = vcmp.eq.f32.partialorder %v62_v7, 8.507059e+37  ;;  %vm193_vm6 = vcmask 0  }
  0x9a   :  { %v88_v43 = vsel %vm86_vm7, %v87_v41, %v85_v42 }
  0x9b   :  { %v229_v44 = vpop.eup %228  ;;  %v101_v45 = vmax.f32 %v88_v43, 1e-12 }
  0x9c   :  { %v231_v46 = vpop.eup %230  ;;  %v119_v47 = vmul.f32 %v229_v44, %v102_v37  ;;  %vm124_vm8 = vweird.f32 %v229_v44 }
  0x9d   :  { %232 = vrcp.f32 %v101_v45  ;;  %v54_v49 = vmul.f32 %v231_v46, %v52_v38  ;;  %vm125_vm10 = vmor %vm123_vm9, %vm124_vm8  ;;  %v114_v63 = vand.u32 2147483648, %v101_v45  ;;  %vm59_vm12 = vweird.f32 %v231_v46 }
  0x9e   :  { %v120_v48 = vsub.f32 1.0, %v119_v47  ;;  %v112_v5 = vand.u32 2147483647, %v101_v45  ;;  %vm108_vm15 = vweird.f32 %v101_v45  ;;  %vm60_vm0 = vmor %vm58_vm14, %vm59_vm12 }
  0x9f   :  { %v55_v53 = vsub.f32 1.0, %v54_v49  ;;  %v115_v9 = vor.u32 1.1754944e-38, %v114_v63 }
  0xa0   :  { %v121_v51 = vmul.f32 %v229_v44, %v120_v48  ;;  %vm113_vm3 = vcmp.eq.f32.partialorder %v112_v5, 8.507059e+37 }
  0xa1   :  { %v56_v57 = vmul.f32 %v231_v46, %v55_v53 }
  0xa2   :  { %v122_v54 = vadd.f32 %v229_v44, %v121_v51 }
  0xa3   :  { %v233_v55 = vpop.eup %232  ;;  %v57_v2 = vadd.f32 %v231_v46, %v56_v57 }
  0xa4   :  { %v126_v58 = vsel %vm125_vm10, %v229_v44, %v122_v54  ;;  %v104_v59 = vmul.f32 %v233_v55, %v101_v45  ;;  %vm109_vm13 = vweird.f32 %v233_v55 }
  0xa5   :  { %v131_v60 = vsel %vm128_vm11, %v130_v56, %v126_v58  ;;  %vm110_vm2 = vmor %vm108_vm15, %vm109_vm13  ;;  %v61_v10 = vsel %vm60_vm0, %v231_v46, %v57_v2 }
  0xa6   :  { %v132_v61 = vmul.f32 %v131_v60, %v318_v0  ;;  %v105_v62 = vsub.f32 1.0, %v104_v59  ;;  %v65_v0 = vor.u32 1.1754944e-38, %v64_v6 }
  0xa8   :  { %212 = vmatpush.xpose.msk.msra.mxu0 %vm36_vm1, %v132_v61  ;;  %v106_v3 = vmul.f32 %v233_v55, %v105_v62  ;;  %v66_v14 = vsel %vm63_vm4, %v65_v0, %v61_v10 }
  0xa9   :  { %v67_v15 = vmul.f32 %v66_v14, %v323_v1  ;;  %v34_v1 = vld [vmem:[%s352_s2] sm:$0xff]  ;;  %s294_s2 = smov [#allocation5]  }
  0xaa   :  { %v107_v8 = vadd.f32 %v233_v55, %v106_v3  ;;  %s200_s21 = sshll.u32 %s294_s2, 4  ;;  %s201_s21 = int_to_ptr.vmem [resolvable:$true] %s200_s21 }
  0xac   :  { %v111_v11 = vsel %vm110_vm2, %v233_v55, %v107_v8 }
  0xad   :  { %v116_v12 = vsel %vm113_vm3, %v115_v9, %v111_v11 }
  0xae   :  { %v117_v13 = vmul.f32 %v116_v12, %v329_v4 }
  0xb0   :  { %213 = vmatpush.xpose.msk.msra.mxu0 %vm36_vm1, %v117_v13 }
  0xb3   :  { %214 = vmatmul.msk.f32.vlgmr.msra.gmra.mxu0 %vm36_vm1, %v67_v15 }
 0x130   :  { %v159_v16 = vpop.f32.mrf.mxu0 }
 0x131   :  { %v163_v17 = vsel %vm162_vm5, %v159_v16, -inf }
 0x132   :  { %164 = vmax.xlane.f32.xlu1 %v163_v17 }
 0x1a5   :  { %v165_v19 = vpop.xlane.xlu1 %164 }
 0x1a6   :  { %v166_v20 = vsub.f32 %v159_v16, %v165_v19 }
 0x1a8   :  { %v167_v21 = vmul.f32 1.442695, %v166_v20 }
 0x1aa   :  { %234 = vpow2.f32 %v167_v21 }
 0x1b0   :  { %v235_v4 = vpop.eup %234 }
 0x1b1   :  { %v169_v22 = vsel %vm162_vm5, %v235_v4, 0.0 }
 0x1b2   :  { %170 = vadd.xlane.f32.xlu2 %v169_v22 }
 0x1ca   :  { %178 = vperm.xlu2 %220, %v34_v1  }
 0x225   :  { %v171_v23 = vpop.xlane.xlu2 %170 }
 0x226   :  { %236 = vlog2.f32 %v171_v23 }
 0x22c   :  { %v237_v26 = vpop.eup %236 }
 0x22d   :  { %v173_v27 = vmul.f32 0.6931472, %v237_v26  ;;  %v179_v28 = vpop.permute.xlu2 %178 }
 0x22e   :  { %vm180_vm1 = vcmp.eq.s32.totalorder %v176_v25, %v179_v28 }
 0x22f   :  { %v174_v29 = vsub.f32 %v166_v20, %v173_v27 }
 0x231   :  { %v181_v30 = vsel %vm180_vm1, %v174_v29, 0.0 }
 0x232   :  { %v182_v31 = vsel %vm162_vm5, %v181_v30, 0.0 }
 0x233   :  { %183 = vadd.xlane.f32.xlu0 %v182_v31 }
 0x2a6   :  { %v184_v32 = vpop.xlane.xlu0 %183 }
 0x2a7   :  { %v185_v33 = vrot.slane %v184_v32, 4 }
 0x2a9   :  { %v186_v34 = vadd.f32 %v185_v33, %v184_v32 }
 0x2ab   :  { %v187_v35 = vrot.slane %v186_v34, 2 }
 0x2ad   :  { %v188_v36 = vadd.f32 %v187_v35, %v186_v34 }
 0x2af   :  { %v189_v37 = vrot.slane %v188_v36, 1 }
 0x2b1   :  { %v190_v38 = vadd.f32 %v189_v37, %v188_v36 }
 0x2b3   :  { %v191_v39 = vsub.f32 0.0, %v190_v38 }
 0x2b5   :  { %v192_v40 = vmul.f32 0.125, %v191_v39 }
 0x2b7   :  { %194 = vst.msk [vmem:[#allocation5] sm:$0x1] %vm193_vm6, %v192_v40 }
 0x2b8   :  { %205 = dma.vmem_to_hbm [thread:$0]  %s201_s21, 16, %s203_s24, [#allocation4]  }
 0x2b9   :  { %288 = dma.done.wait [#allocation4], 16  }
 0x2ba   :  { %289 = vsyncadd [#allocation4], 4294967280 }
 0x2bb   :  { %210 = vsyncpa [#allocation3], 1 }
 0x2bc   :  { %211 = vsyncpa [#allocation4], 1 }

</bundles_post_ra>
